<compile_context>
chip_gen: v6e
topology: v6e:2x2x1
jax: 0.10.0
libtpu: 0.0.40
codegen_flags: <defaults>
</compile_context>

<pallas_src>
import functools

import jax
import jax.numpy as jnp
from jax.experimental import pallas as pl
from jax.experimental.pallas import tpu as pltpu  # noqa: F401  (TPU backend)


def memcell_kernel(x_ref, state_ref, key_ref, u_ref, v_ref, w_ref, b_ref, out_ref):
    """Single invocation over all memory blocks.

    Shapes inside the kernel (rows are flattened as r = b*num_blocks + j):
      x_ref     : (bs*nb, E)  row r carries x[b]
      state_ref : (bs*nb, E)  row r carries state_j of batch b
      key_ref   : (bs*nb, E)  row r carries key_j
      u/v/w_ref : (E, E)      PyTorch (out, in) convention
      b_ref     : (1, E)
      out_ref   : (bs*nb, E)
    """
    x = x_ref[...]
    s = state_ref[...]
    k = key_ref[...]

    # gate_j = sigmoid(<x, state_j> + <x, key_j>)                      (bs*nb, 1)
    gate = jax.nn.sigmoid(
        jnp.sum(x * s, axis=1, keepdims=True)
        + jnp.sum(x * k, axis=1, keepdims=True)
    )

    # candidate_j = ReLU(U(state_j) + bias + W(x) + V(key_j)).
    # PyTorch Linear is y = x @ W.T with W (out, in): contract the `in` dim of
    # both operands -> no transposes needed, three batched MXU dots total.
    dn = (((1,), (1,)), ((), ()))
    state_u = jax.lax.dot_general(s, u_ref[...], dn, preferred_element_type=jnp.float32)
    inputs_w = jax.lax.dot_general(x, w_ref[...], dn, preferred_element_type=jnp.float32)
    key_v = jax.lax.dot_general(k, v_ref[...], dn, preferred_element_type=jnp.float32)
    cand = jnp.maximum(state_u + b_ref[...] + inputs_w + key_v, 0.0)   # ReLU

    # state update + Threshold(0.0, 1.0) + L2 normalization.
    s_next = s + gate * cand
    norm = jnp.sqrt(jnp.sum(s_next * s_next, axis=1, keepdims=True)) + 1e-8
    inv = pl.reciprocal(norm, approx=False)  # exact: approx EUP path breaks 1e-5 tol
    out_ref[...] = jnp.where(s_next > 0.0, s_next, jnp.float32(1.0)) * inv


@functools.partial(jax.jit, static_argnames=("num_blocks", "embed_size"))
def memcell_forward(x, state, keys, u_w, v_w, w_w, bias, *, num_blocks, embed_size):
    """x: (bs, E); state: (bs, nb*E); keys: (nb, E); u/v/w: (E, E) (out, in);
    bias: (E,).  Returns next state of shape (bs, nb*E)."""
    bs = x.shape[0]
    nb, E = num_blocks, embed_size

    # Zero-copy reshape: (bs, nb*E) -> (bs*nb, E), row r = b*nb + j.
    state_flat = state.reshape(bs * nb, E)
    # Tiny replication fusions (fused under jit, no transposes through HBM).
    x_rep = jnp.repeat(x, nb, axis=0)      # row r -> x[r // nb]
    keys_rep = jnp.tile(keys, (bs, 1))     # row r -> keys[r % nb]

    out_flat = pl.pallas_call(
        memcell_kernel,
        out_shape=jax.ShapeDtypeStruct((bs * nb, E), jnp.float32),
    )(x_rep, state_flat, keys_rep, u_w, v_w, w_w, bias.reshape(1, E))

    # Zero-copy reshape back; matches torch.cat(next_states, dim=1).
    return out_flat.reshape(bs, nb * E)


def memcell_reference(x, state, keys, u_w, v_w, w_w, bias, *, num_blocks, embed_size):
    """Pure-JAX reference mirroring the PyTorch forward (activation = ReLU)."""
    E = embed_size
    outs = []
    for j in range(num_blocks):
        state_j = state[:, j * E:(j + 1) * E]                 # (bs, E)
        key_j = keys[j][None, :]                              # (1, E)
        a = jnp.sum(x * state_j, axis=1)
        b = jnp.sum(x * key_j, axis=1)
        gate = jax.nn.sigmoid(a + b)                          # (bs,)
        key_v = key_j @ v_w.T
        state_u = state_j @ u_w.T + bias
        inputs_w = x @ w_w.T
        cand = jnp.maximum(state_u + inputs_w + key_v, 0.0)
        s_next = state_j + gate[:, None] * cand
        norm = jnp.abs(jnp.linalg.norm(s_next, axis=-1, keepdims=True)) + 1e-8
        s_next = jnp.where(s_next > 0.0, s_next, 1.0) / norm
        outs.append(s_next)
    return jnp.concatenate(outs, axis=1)


if __name__ == "__main__":
    bs = 2
    num_blocks = 4
    embed_size = 32

    key = jax.random.PRNGKey(0)
    k_x, k_s, k_keys, k_u, k_v, k_w, k_b = jax.random.split(key, 7)

    x = jax.random.normal(k_x, (bs, embed_size), dtype=jnp.float32)
    state = jax.random.normal(k_s, (bs, num_blocks * embed_size), dtype=jnp.float32)

    # Deterministic "parameter" init: normal(0, 0.1), matching the module.
    keys_param = 0.1 * jax.random.normal(k_keys, (num_blocks, embed_size), dtype=jnp.float32)
    u_w = 0.1 * jax.random.normal(k_u, (embed_size, embed_size), dtype=jnp.float32)
    v_w = 0.1 * jax.random.normal(k_v, (embed_size, embed_size), dtype=jnp.float32)
    w_w = 0.1 * jax.random.normal(k_w, (embed_size, embed_size), dtype=jnp.float32)
    bias = 0.1 * jax.random.normal(k_b, (embed_size,), dtype=jnp.float32)

    out = memcell_forward(
        x, state, keys_param, u_w, v_w, w_w, bias,
        num_blocks=num_blocks, embed_size=embed_size,
    )
    out = jax.block_until_ready(out)

    ref = memcell_reference(
        x, state, keys_param, u_w, v_w, w_w, bias,
        num_blocks=num_blocks, embed_size=embed_size,
    )
    assert out.shape == (bs, num_blocks * embed_size)
    assert jnp.allclose(out, ref, atol=1e-5, rtol=1e-5)

    print("KERNEL_OK")
</pallas_src>

<mosaic_0001>
module attributes {stable_mosaic.version = 11 : i64} {
  func.func @memcell_kernel(%arg0: memref<8x32xf32, #tpu.memory_space<vmem>>, %arg1: memref<8x32xf32, #tpu.memory_space<vmem>>, %arg2: memref<8x32xf32, #tpu.memory_space<vmem>>, %arg3: memref<32x32xf32, #tpu.memory_space<vmem>>, %arg4: memref<32x32xf32, #tpu.memory_space<vmem>>, %arg5: memref<32x32xf32, #tpu.memory_space<vmem>>, %arg6: memref<1x32xf32, #tpu.memory_space<vmem>>, %arg7: memref<8x32xf32, #tpu.memory_space<vmem>>) attributes {dimension_semantics = [], scalar_prefetch = 0 : i64, scratch_operands = 0 : i64, tpu.core_type = #tpu.core_type<tc>} {
    %c0 = arith.constant 0 : index
    %c0_0 = arith.constant 0 : index
    %0 = vector.load %arg0[%c0, %c0_0] : memref<8x32xf32, #tpu.memory_space<vmem>>, vector<8x32xf32>
    %c0_1 = arith.constant 0 : index
    %c0_2 = arith.constant 0 : index
    %1 = vector.load %arg1[%c0_1, %c0_2] : memref<8x32xf32, #tpu.memory_space<vmem>>, vector<8x32xf32>
    %c0_3 = arith.constant 0 : index
    %c0_4 = arith.constant 0 : index
    %2 = vector.load %arg2[%c0_3, %c0_4] : memref<8x32xf32, #tpu.memory_space<vmem>>, vector<8x32xf32>
    %3 = arith.mulf %0, %1 : vector<8x32xf32>
    %cst = arith.constant dense<0.000000e+00> : vector<8xf32>
    %4 = vector.multi_reduction <add>, %3, %cst [1] : vector<8x32xf32> to vector<8xf32>
    %5 = vector.shape_cast %4 : vector<8xf32> to vector<8x1xf32>
    %6 = arith.mulf %0, %2 : vector<8x32xf32>
    %cst_5 = arith.constant dense<0.000000e+00> : vector<8xf32>
    %7 = vector.multi_reduction <add>, %6, %cst_5 [1] : vector<8x32xf32> to vector<8xf32>
    %8 = vector.shape_cast %7 : vector<8xf32> to vector<8x1xf32>
    %9 = arith.addf %5, %8 : vector<8x1xf32>
    %10 = arith.negf %9 : vector<8x1xf32>
    %11 = math.exp %10 : vector<8x1xf32>
    %cst_6 = arith.constant 1.000000e+00 : f32
    %12 = vector.broadcast %cst_6 : f32 to vector<8x1xf32>
    %13 = arith.addf %12, %11 : vector<8x1xf32>
    %14 = arith.divf %12, %13 : vector<8x1xf32>
    %c0_7 = arith.constant 0 : index
    %c0_8 = arith.constant 0 : index
    %15 = vector.load %arg3[%c0_7, %c0_8] : memref<32x32xf32, #tpu.memory_space<vmem>>, vector<32x32xf32>
    %cst_9 = arith.constant dense<0.000000e+00> : vector<8x32xf32>
    %16 = tpu.matmul %1, %15, %cst_9 {dimension_numbers = #tpu.dot_dimension_numbers<[1], [1], [0], [0], [0, 0, 1, 0], [], []>} : vector<8x32xf32>, vector<32x32xf32>, vector<8x32xf32> -> vector<8x32xf32>
    %c0_10 = arith.constant 0 : index
    %c0_11 = arith.constant 0 : index
    %17 = vector.load %arg5[%c0_10, %c0_11] : memref<32x32xf32, #tpu.memory_space<vmem>>, vector<32x32xf32>
    %cst_12 = arith.constant dense<0.000000e+00> : vector<8x32xf32>
    %18 = tpu.matmul %0, %17, %cst_12 {dimension_numbers = #tpu.dot_dimension_numbers<[1], [1], [0], [0], [0, 0, 1, 0], [], []>} : vector<8x32xf32>, vector<32x32xf32>, vector<8x32xf32> -> vector<8x32xf32>
    %c0_13 = arith.constant 0 : index
    %c0_14 = arith.constant 0 : index
    %19 = vector.load %arg4[%c0_13, %c0_14] : memref<32x32xf32, #tpu.memory_space<vmem>>, vector<32x32xf32>
    %cst_15 = arith.constant dense<0.000000e+00> : vector<8x32xf32>
    %20 = tpu.matmul %2, %19, %cst_15 {dimension_numbers = #tpu.dot_dimension_numbers<[1], [1], [0], [0], [0, 0, 1, 0], [], []>} : vector<8x32xf32>, vector<32x32xf32>, vector<8x32xf32> -> vector<8x32xf32>
    %c0_16 = arith.constant 0 : index
    %c0_17 = arith.constant 0 : index
    %21 = vector.load %arg6[%c0_16, %c0_17] : memref<1x32xf32, #tpu.memory_space<vmem>>, vector<1x32xf32>
    %22 = vector.broadcast %21 : vector<1x32xf32> to vector<8x32xf32>
    %23 = arith.addf %16, %22 : vector<8x32xf32>
    %24 = arith.addf %23, %18 : vector<8x32xf32>
    %25 = arith.addf %24, %20 : vector<8x32xf32>
    %cst_18 = arith.constant 0.000000e+00 : f32
    %26 = vector.broadcast %cst_18 : f32 to vector<8x32xf32>
    %27 = arith.maximumf %25, %26 : vector<8x32xf32>
    %28 = vector.broadcast %14 : vector<8x1xf32> to vector<8x32xf32>
    %29 = arith.mulf %28, %27 : vector<8x32xf32>
    %30 = arith.addf %1, %29 : vector<8x32xf32>
    %31 = arith.mulf %30, %30 : vector<8x32xf32>
    %cst_19 = arith.constant dense<0.000000e+00> : vector<8xf32>
    %32 = vector.multi_reduction <add>, %31, %cst_19 [1] : vector<8x32xf32> to vector<8xf32>
    %33 = vector.shape_cast %32 : vector<8xf32> to vector<8x1xf32>
    %34 = math.sqrt %33 : vector<8x1xf32>
    %cst_20 = arith.constant 9.99999993E-9 : f32
    %35 = vector.broadcast %cst_20 : f32 to vector<8x1xf32>
    %36 = arith.addf %34, %35 : vector<8x1xf32>
    %37 = tpu.reciprocal %36 : vector<8x1xf32> -> vector<8x1xf32>
    %cst_21 = arith.constant 0.000000e+00 : f32
    %38 = vector.broadcast %cst_21 : f32 to vector<8x32xf32>
    %39 = arith.cmpf ogt, %30, %38 : vector<8x32xf32>
    %cst_22 = arith.constant 1.000000e+00 : f32
    %40 = vector.broadcast %cst_22 : f32 to vector<8x32xf32>
    %41 = arith.select %39, %30, %40 : vector<8x32xi1>, vector<8x32xf32>
    %42 = vector.broadcast %37 : vector<8x1xf32> to vector<8x32xf32>
    %43 = arith.mulf %41, %42 : vector<8x32xf32>
    %c0_23 = arith.constant 0 : index
    %c0_24 = arith.constant 0 : index
    %44 = vector.load %arg7[%c0_23, %c0_24] : memref<8x32xf32, #tpu.memory_space<vmem>>, vector<8x32xf32>
    tpu.vector_store %arg7[%c0_23, %c0_24], %43 {strides = array<i32>} : memref<8x32xf32, #tpu.memory_space<vmem>>, vector<8x32xf32>,
    return
  }
}

</mosaic_0001>

<bundles_post_ra>
// kernel: memcell_forward.1
= control target key start
LH: loop header
LB: loop body
LE: loop exit
PB: predicated region body
PF: predicated region fallthrough
CT: control target
= control target key end

     0   :  { %12 = vsyncpa [#allocation3], 0  ;;  %s599_s0 = inlined_call_operand.vmem [shape: f32[8,32], index: 0, kind: input, shape index: {}]   ;;  %s600_s1 = inlined_call_operand.vmem [shape: f32[8,32], index: 1, kind: input, shape index: {}]   ;;  %s601_s2 = inlined_call_operand.vmem [shape: f32[8,32], index: 2, kind: input, shape index: {}]   ;;  %s602_s3 = inlined_call_operand.vmem [shape: f32[32,32], index: 3, kind: input, shape index: {}]   ;;  %s603_s4 = inlined_call_operand.hbm [shape: f32[32,32], index: 4, kind: input, shape index: {}]   ;;  %s604_s5 = inlined_call_operand.hbm [shape: f32[32,32], index: 5, kind: input, shape index: {}]   ;;  %s605_s6 = inlined_call_operand.vmem [shape: f32[1,32], index: 6, kind: input, shape index: {}]   ;;  %s606_s7 = inlined_call_operand.vmem [shape: f32[8,32], index: 7, kind: output, shape index: {}]  }
   0x1   :  { %13 = vsyncpa [#allocation5], 0  ;;  %s498_s24 = smov [#allocation2]  }
   0x2   :  { %s27_s25 = sshll.u32 %s498_s24, 4  ;;  %s28_s25 = int_to_ptr.vmem [resolvable:$true] %s27_s25 }
   0x3   :  { %s462_s26 = scalar_lea.vmem %s28_s25, 512  ;;  %p467_p1 = scmp.lt.s32.totalorder %s28_s25, %s28_s25 }
   0x4   :  { %p463_p0 = scmp.ne.s32.totalorder %s28_s25, %s462_s26  ;;  %p468_p2 = scmp.lt.s32.totalorder %s462_s26, %s462_s26 }
   0x6   :  { %p469_p3 = por %p468_p2, %p467_p1 }
   0x8   :  { %p470_p4 = pnand %p469_p3, %p463_p0 }
   0xa   :  { %473 = shalt.err (!%p470_p4)
}
   0xb   :  { %s499_s27 = smov 128   ;;  %s500_s28 = smov 8  }
   0xc   :  { %33 = dma.hbm_to_vmem [thread:$0]  %s603_s4, 512, %s28_s25, [#allocation3], %s499_s27, %s499_s27, %s500_s28  }
   0xd   :  { %s501_s8 = smov [#allocation4]  }
   0xe   :  { %s39_s9 = sshll.u32 %s501_s8, 4  ;;  %s40_s9 = int_to_ptr.vmem [resolvable:$true] %s39_s9 }
   0xf   :  { %s482_s10 = scalar_lea.vmem %s40_s9, 512  ;;  %p487_p6 = scmp.lt.s32.totalorder %s40_s9, %s40_s9 }
  0x10   :  { %p483_p5 = scmp.ne.s32.totalorder %s40_s9, %s482_s10  ;;  %p488_p7 = scmp.lt.s32.totalorder %s482_s10, %s482_s10 }
  0x12   :  { %p489_p8 = por %p488_p7, %p487_p6 }
  0x14   :  { %p490_p9 = pnand %p489_p8, %p483_p5 }
  0x16   :  { %493 = shalt.err (!%p490_p9)
}
  0x17   :  { %45 = dma.hbm_to_vmem [thread:$0]  %s604_s5, 512, %s40_s9, [#allocation5], %s499_s27, %s499_s27, %s500_s28  }
  0x18   :  { %494 = dma.done.wait [#allocation3], 512  }
  0x19   :  { %495 = vsyncadd [#allocation3], 4294966784 }
  0x1a   :  { %496 = dma.done.wait [#allocation5], 512  }
  0x1b   :  { %497 = vsyncadd [#allocation5], 4294966784  ;;  %v502_v0 = vmov 0.0   ;;  %vm503_vm0 = vmmov 0   ;;  %vm58_vm1 = vcmask 261120   ;;  %v80_v1 = vld [vmem:[#allocation4 + $0x18] sm:$0xff] }
  0x1c   :  { %407 = vmatprep.subr.mxu0 %v502_v0  ;;  %415 = vmatprep.mubr.msk.f32.mxu0 %vm503_vm0, %v502_v0  ;;  %v79_v2 = vld [vmem:[#allocation4 + $0x10] sm:$0xff]  ;;  %v169_v3 = vld [vmem:[#allocation2 + $0x18] sm:$0xff]  ;;  %v54_v4 = vld [vmem:[%s599_s0] sm:$0xff] }
  0x1d   :  { %418 = vmatprep.subr.mxu1 %v502_v0  ;;  %426 = vmatprep.mubr.msk.f32.mxu1 %vm503_vm0, %v502_v0  ;;  %v168_v5 = vld [vmem:[#allocation2 + $0x10] sm:$0xff]  ;;  %v55_v6 = vld [vmem:[%s600_s1] sm:$0xff]  ;;  %v78_v10 = vld [vmem:[#allocation4 + $0x8] sm:$0xff] }
  0x1e   :  { %408 = vmatpush3.xpose.msk.msra.mxu0 %vm58_vm1, %v80_v1  ;;  %419 = vmatpush3.xpose.msk.msra.mxu1 %vm58_vm1, %v169_v3  ;;  %v56_v7 = vld [vmem:[%s601_s2] sm:$0xff]  ;;  %v57_v8 = vmul.f32 %v55_v6, %v54_v4  ;;  %v167_v12 = vld [vmem:[#allocation2 + $0x8] sm:$0xff]  ;;  %v76_v16 = vld [vmem:[%s602_s3 + $0x18] sm:$0xff] }
  0x1f   :  { %409 = vmatprep.subr.mxu0 %v502_v0  ;;  %420 = vmatprep.subr.mxu1 %v502_v0  ;;  %v62_v9 = vmul.f32 %v56_v7, %v54_v4  ;;  %v77_v14 = vld [vmem:[#allocation4] sm:$0xff]  ;;  %v75_v17 = vld [vmem:[%s602_s3 + $0x10] sm:$0xff]  ;;  %v74_v18 = vld [vmem:[%s602_s3 + $0x8] sm:$0xff] }
  0x20   :  { %v59_v11 = vsel %vm58_vm1, %v57_v8, 0.0  ;;  %v166_v15 = vld [vmem:[#allocation2] sm:$0xff] }
  0x21   :  { %60 = vadd.xlane.f32.xlu0 %v59_v11  ;;  %v63_v13 = vsel %vm58_vm1, %v62_v9, 0.0  ;;  %v73_v19 = vld [vmem:[%s602_s3] sm:$0xff] }
  0x22   :  { %410 = vmatpush3.xpose.msk.msra.mxu0 %vm58_vm1, %v79_v2  ;;  %421 = vmatpush3.xpose.msk.msra.mxu1 %vm58_vm1, %v168_v5  ;;  %v386_v30 = vld [vmem:[%s605_s6] ss:$0 sm:$0xff] }
  0x23   :  { %411 = vmatprep.subr.mxu0 %v502_v0  ;;  %422 = vmatprep.subr.mxu1 %v502_v0 }
  0x25   :  { %64 = vadd.xlane.f32.xlu0 %v63_v13 }
  0x26   :  { %412 = vmatpush3.xpose.msk.msra.mxu0 %vm58_vm1, %v78_v10  ;;  %423 = vmatpush3.xpose.msk.msra.mxu1 %vm58_vm1, %v167_v12 }
  0x27   :  { %413 = vmatprep.subr.mxu0 %v502_v0  ;;  %424 = vmatprep.subr.mxu1 %v502_v0 }
  0x2a   :  { %414 = vmatpush3.xpose.msk.msra.mxu0 %vm58_vm1, %v77_v14  ;;  %425 = vmatpush3.xpose.msk.msra.mxu1 %vm58_vm1, %v166_v15 }
  0x2b   :  { %429 = vmatprep.subr.mxu0 %v502_v0 }
  0x2d   :  { %416 = vmatmul.mubr.msk.f32.vlgmr.msra.gmra.mxu0 %vm58_vm1, %v54_v4  ;;  %427 = vmatmul.mubr.msk.f32.vlgmr.msra.gmra.mxu1 %vm58_vm1, %v56_v7 }
  0x2e   :  { %430 = vmatpush3.xpose.msk.msra.mxu0 %vm58_vm1, %v76_v16  ;;  %437 = vmatprep.mubr.msk.f32.mxu0 %vm503_vm0, %v502_v0 }
  0x2f   :  { %431 = vmatprep.subr.mxu0 %v502_v0 }
  0x32   :  { %432 = vmatpush3.xpose.msk.msra.mxu0 %vm58_vm1, %v75_v17 }
  0x33   :  { %433 = vmatprep.subr.mxu0 %v502_v0 }
  0x36   :  { %434 = vmatpush3.xpose.msk.msra.mxu0 %vm58_vm1, %v74_v18 }
  0x37   :  { %435 = vmatprep.subr.mxu0 %v502_v0 }
  0x3a   :  { %436 = vmatpush3.xpose.msk.msra.mxu0 %vm58_vm1, %v73_v19 }
  0x3d   :  { %438 = vmatmul.mubr.msk.f32.vlgmr.msra.gmra.mxu0 %vm58_vm1, %v55_v6 }
  0xaa   :  { %v61_v20 = vpop.xlane.xlu0 %60 }
  0xae   :  { %v65_v21 = vpop.xlane.xlu0 %64 }
  0xaf   :  { %v66_v22 = vadd.f32 %v65_v21, %v61_v20 }
  0xb1   :  { %v375_v23 = vmul.f32 -1.442695, %v66_v22 }
  0xb3   :  { %446 = vpow2.f32 %v375_v23 }
  0xc0   :  { %v447_v27 = vpop.eup %446 }
  0xc1   :  { %v70_v29 = vadd.f32 1.0, %v447_v27 }
  0xc3   :  { %448 = vrcp.f32 %v70_v29 }
  0xd0   :  { %v449_v37 = vpop.eup %448 }
  0xed   :  { %v162_v24 = vpop.f32.mrf.mxu0  ;;  %v251_v26 = vpop.f32.mrf.mxu1 }
  0xef   :  { %v417_v25 = vpop.f32.mrf.mxu0  ;;  %v428_v28 = vpop.f32.mrf.mxu1 }
  0xfd   :  { %v343_v31 = vpop.f32.mrf.mxu0 }
  0xfe   :  { %v344_v32 = vadd.f32 %v386_v30, %v343_v31 }
  0xff   :  { %v439_v33 = vpop.f32.mrf.mxu0 }
 0x100   :  { %v347_v34 = vadd.f32 %v344_v32, %v162_v24 }
 0x102   :  { %v348_v35 = vadd.f32 %v347_v34, %v251_v26 }
 0x104   :  { %v349_v36 = vmax.f32 %v348_v35, 0.0 }
 0x106   :  { %v350_v38 = vmul.f32 %v449_v37, %v349_v36 }
 0x108   :  { %v351_v39 = vadd.f32 %v350_v38, %v55_v6 }
 0x10a   :  { %v352_v40 = vmul.f32 %v351_v39, %v351_v39  ;;  %vm365_vm4 = vcmp.gt.f32.partialorder %v351_v39, 0.0 }
 0x10b   :  { %v366_v50 = vsel %vm365_vm4, %v351_v39, 1.0 }
 0x10c   :  { %v353_v41 = vsel %vm58_vm1, %v352_v40, 0.0 }
 0x10d   :  { %354 = vadd.xlane.f32.xlu1 %v353_v41 }
 0x196   :  { %v355_v42 = vpop.xlane.xlu1 %354 }
 0x197   :  { %450 = vrsqrt.f32 %v355_v42  ;;  %vm358_vm2 = vcmp.eq.f32.partialorder %v355_v42, inf  ;;  %v361_v45 = vand.u32 2147483648, %v355_v42  ;;  %vm360_vm3 = vcmp.eq.f32.partialorder %v355_v42, 0.0 }
 0x1a4   :  { %v451_v43 = vpop.eup %450 }
 0x1a5   :  { %v357_v44 = vmul.f32 %v451_v43, %v355_v42 }
 0x1a7   :  { %v359_v46 = vsel %vm358_vm2, %v355_v42, %v357_v44 }
 0x1a8   :  { %v362_v47 = vsel %vm360_vm3, %v361_v45, %v359_v46 }
 0x1a9   :  { %v363_v48 = vadd.f32 1e-08, %v362_v47 }
 0x1ab   :  { %452 = vrcp.f32 %v363_v48 }
 0x1b8   :  { %v453_v49 = vpop.eup %452 }
 0x1b9   :  { %v367_v51 = vmul.f32 %v453_v49, %v366_v50 }
 0x1bb   :  { %368 = vst.msk [vmem:[%s606_s7] sm:$0xff] %vm58_vm1, %v367_v51 }
 0x1bc   :  { %373 = vsyncpa [#allocation3], 1 }
 0x1bd   :  { %374 = vsyncpa [#allocation5], 1 }

</bundles_post_ra>
